<compile_context>
chip_gen: v7x
topology: tpu7x:2x2x1
jax: 0.10.0
libtpu: 0.0.40
codegen_flags: <defaults>
</compile_context>

<pallas_src>
import jax
import jax.numpy as jnp
from jax import lax
from jax.experimental import pallas as pl
from jax.experimental.pallas import tpu as pltpu


def lstm_kernel(x_ref, wih_ref, whh_ref, b_ref, wlin_ref, blin_ref, out_ref):
    seq, in_size = x_ref.shape
    hidden = whh_ref.shape[0]
    out_size = out_ref.shape[1]

    x = x_ref[...]
    whh = whh_ref[...]
    b = b_ref[...]

    # Input projection for the whole sequence: (seq, 4H) = x @ W_ih^T + (b_ih+b_hh).
    # input_size == 1 => a VPU broadcast multiply-add beats a K=1 MXU matmul.
    if in_size == 1:
        xg = x * wih_ref[...] + b
    else:
        xg = jnp.dot(x, wih_ref[...], preferred_element_type=jnp.float32) + b

    # PyTorch module starts from zero hidden_cell; carry h/c as values.
    h = jnp.zeros((1, hidden), jnp.float32)
    c = jnp.zeros((1, hidden), jnp.float32)

    # seq is a static Python int -> fully unrolled recurrence.
    for t in range(seq):
        # gates: (1, 4H) = x_t @ W_ih^T + b + h_{t-1} @ W_hh^T
        gates = xg[t:t + 1, :] + jnp.dot(
            h, whh, preferred_element_type=jnp.float32)
        # 2 full-vreg transcendental pushes per step instead of 4 sliced ones.
        sig = jax.nn.sigmoid(gates)
        th = jnp.tanh(gates)
        i = sig[:, 0 * hidden:1 * hidden]
        f = sig[:, 1 * hidden:2 * hidden]
        g = th[:, 2 * hidden:3 * hidden]
        o = sig[:, 3 * hidden:4 * hidden]
        c = f * c + i * g
        h = o * jnp.tanh(c)

    # predictions[-1] == Linear(h_last).  out_size == 1 => multiply + lane
    # reduce instead of an under-filled (1,H)@(H,1) MXU pass.
    if out_size == 1 and wlin_ref.shape == (1, hidden):
        out_ref[...] = (jnp.sum(h * wlin_ref[...], axis=-1, keepdims=True)
                        + blin_ref[...])
    else:
        out_ref[...] = (jnp.dot(h, wlin_ref[...],
                                preferred_element_type=jnp.float32)
                        + blin_ref[...])


def prepare_params(w_ih, w_hh, b_ih, b_hh, w_lin, b_lin):
    """One-time parameter preprocessing (hoisted out of the per-call path)."""
    hidden = w_hh.shape[1]
    out_size = w_lin.shape[0]
    wih_t = jnp.transpose(w_ih)                   # (input_size, 4H)
    whh_t = jnp.transpose(w_hh)                   # (H, 4H)
    b = (b_ih + b_hh).reshape(1, 4 * hidden)      # (1, 4H)
    if out_size == 1:
        wlin = w_lin.reshape(1, hidden)           # (1, H)   -> lane-reduce path
    else:
        wlin = jnp.transpose(w_lin)               # (H, out) -> MXU path
    blin = b_lin.reshape(1, out_size)             # (1, out)
    return wih_t, whh_t, b, wlin, blin


@jax.jit
def lstm_forward(x, wih_t, whh_t, b, wlin, blin):
    """x: (seq, input_size) f32, pre-transposed params.  Returns (out_size,)."""
    out_size = blin.shape[1]
    out = pl.pallas_call(
        lstm_kernel,
        out_shape=jax.ShapeDtypeStruct((1, out_size), jnp.float32),
        in_specs=[pl.BlockSpec(memory_space=pltpu.MemorySpace.VMEM)] * 6,
        out_specs=pl.BlockSpec(memory_space=pltpu.MemorySpace.VMEM),
    )(x, wih_t, whh_t, b, wlin, blin)
    return out[0]


def lstm_ref(x, w_ih, w_hh, b_ih, b_hh, w_lin, b_lin):
    """Pure-JAX reference matching torch.nn.LSTM + Linear, batch=1, zero state."""
    hidden = w_hh.shape[1]
    h = jnp.zeros((hidden,), jnp.float32)
    c = jnp.zeros((hidden,), jnp.float32)
    for t in range(x.shape[0]):
        gates = w_ih @ x[t] + b_ih + w_hh @ h + b_hh
        i = jax.nn.sigmoid(gates[0 * hidden:1 * hidden])
        f = jax.nn.sigmoid(gates[1 * hidden:2 * hidden])
        g = jnp.tanh(gates[2 * hidden:3 * hidden])
        o = jax.nn.sigmoid(gates[3 * hidden:4 * hidden])
        c = f * c + i * g
        h = o * jnp.tanh(c)
    return w_lin @ h + b_lin


if __name__ == "__main__":
    seq = 8
    input_size = 1        # forward does input_seq.view(len, 1, -1) on a 1-D sequence
    hidden = 32
    output_size = 1

    key = jax.random.PRNGKey(0)
    kx, k1, k2, k3, k4, k5, k6 = jax.random.split(key, 7)
    bound = 1.0 / jnp.sqrt(hidden)

    # Deterministic synthetic parameters (PyTorch nn.LSTM / nn.Linear shapes).
    w_ih = jax.random.uniform(k1, (4 * hidden, input_size), jnp.float32, -bound, bound)
    w_hh = jax.random.uniform(k2, (4 * hidden, hidden), jnp.float32, -bound, bound)
    b_ih = jax.random.uniform(k3, (4 * hidden,), jnp.float32, -bound, bound)
    b_hh = jax.random.uniform(k4, (4 * hidden,), jnp.float32, -bound, bound)
    w_lin = jax.random.uniform(k5, (output_size, hidden), jnp.float32, -bound, bound)
    b_lin = jax.random.uniform(k6, (output_size,), jnp.float32, -bound, bound)

    # input_seq: 1-D sequence -> view as (seq, input_size) with batch dim of 1 squeezed.
    x = jax.random.normal(kx, (seq, input_size), jnp.float32)

    params = prepare_params(w_ih, w_hh, b_ih, b_hh, w_lin, b_lin)
    params = jax.tree_util.tree_map(jax.block_until_ready, params)

    pred = lstm_forward(x, *params)
    pred = jax.block_until_ready(pred)

    ref = lstm_ref(x, w_ih, w_hh, b_ih, b_hh, w_lin, b_lin)
    assert pred.shape == (output_size,)
    assert jnp.allclose(pred, ref, atol=1e-5, rtol=1e-5), (pred, ref)

    print("KERNEL_OK")
</pallas_src>

<mosaic_0001>
module attributes {stable_mosaic.version = 11 : i64} {
  func.func @lstm_kernel(%arg0: memref<8x1xf32, #tpu.memory_space<vmem>>, %arg1: memref<1x128xf32, #tpu.memory_space<vmem>>, %arg2: memref<32x128xf32, #tpu.memory_space<vmem>>, %arg3: memref<1x128xf32, #tpu.memory_space<vmem>>, %arg4: memref<1x32xf32, #tpu.memory_space<vmem>>, %arg5: memref<1x1xf32, #tpu.memory_space<vmem>>, %arg6: memref<1x1xf32, #tpu.memory_space<vmem>>) attributes {dimension_semantics = [], scalar_prefetch = 0 : i64, scratch_operands = 0 : i64, tpu.core_type = #tpu.core_type<tc>} {
    %c0 = arith.constant 0 : index
    %c0_0 = arith.constant 0 : index
    %0 = vector.load %arg0[%c0, %c0_0] : memref<8x1xf32, #tpu.memory_space<vmem>>, vector<8x1xf32>
    %c0_1 = arith.constant 0 : index
    %c0_2 = arith.constant 0 : index
    %1 = vector.load %arg2[%c0_1, %c0_2] : memref<32x128xf32, #tpu.memory_space<vmem>>, vector<32x128xf32>
    %c0_3 = arith.constant 0 : index
    %c0_4 = arith.constant 0 : index
    %2 = vector.load %arg3[%c0_3, %c0_4] : memref<1x128xf32, #tpu.memory_space<vmem>>, vector<1x128xf32>
    %c0_5 = arith.constant 0 : index
    %c0_6 = arith.constant 0 : index
    %3 = vector.load %arg1[%c0_5, %c0_6] : memref<1x128xf32, #tpu.memory_space<vmem>>, vector<1x128xf32>
    %4 = vector.broadcast %0 : vector<8x1xf32> to vector<8x128xf32>
    %5 = vector.broadcast %3 : vector<1x128xf32> to vector<8x128xf32>
    %6 = arith.mulf %4, %5 : vector<8x128xf32>
    %7 = vector.broadcast %2 : vector<1x128xf32> to vector<8x128xf32>
    %8 = arith.addf %6, %7 : vector<8x128xf32>
    %cst = arith.constant 0.000000e+00 : f32
    %9 = vector.broadcast %cst : f32 to vector<1x32xf32>
    %cst_7 = arith.constant 0.000000e+00 : f32
    %10 = vector.broadcast %cst_7 : f32 to vector<1x32xf32>
    %11 = vector.extract_strided_slice %8 {offsets = [0, 0], sizes = [1, 128], strides = [1, 1]} : vector<8x128xf32> to vector<1x128xf32>
    %cst_8 = arith.constant dense<0.000000e+00> : vector<1x128xf32>
    %12 = tpu.matmul %9, %1, %cst_8 {dimension_numbers = #tpu.dot_dimension_numbers<[1], [0], [0], [1], [0, 0, 1, 1], [], []>} : vector<1x32xf32>, vector<32x128xf32>, vector<1x128xf32> -> vector<1x128xf32>
    %13 = arith.addf %11, %12 : vector<1x128xf32>
    %14 = arith.negf %13 : vector<1x128xf32>
    %15 = math.exp %14 : vector<1x128xf32>
    %cst_9 = arith.constant 1.000000e+00 : f32
    %16 = vector.broadcast %cst_9 : f32 to vector<1x128xf32>
    %17 = arith.addf %16, %15 : vector<1x128xf32>
    %18 = arith.divf %16, %17 : vector<1x128xf32>
    %19 = math.tanh %13 : vector<1x128xf32>
    %20 = vector.extract_strided_slice %18 {offsets = [0, 0], sizes = [1, 32], strides = [1, 1]} : vector<1x128xf32> to vector<1x32xf32>
    %21 = vector.extract_strided_slice %18 {offsets = [0, 32], sizes = [1, 32], strides = [1, 1]} : vector<1x128xf32> to vector<1x32xf32>
    %22 = vector.extract_strided_slice %19 {offsets = [0, 64], sizes = [1, 32], strides = [1, 1]} : vector<1x128xf32> to vector<1x32xf32>
    %23 = vector.extract_strided_slice %18 {offsets = [0, 96], sizes = [1, 32], strides = [1, 1]} : vector<1x128xf32> to vector<1x32xf32>
    %24 = arith.mulf %21, %10 : vector<1x32xf32>
    %25 = arith.mulf %20, %22 : vector<1x32xf32>
    %26 = arith.addf %24, %25 : vector<1x32xf32>
    %27 = math.tanh %26 : vector<1x32xf32>
    %28 = arith.mulf %23, %27 : vector<1x32xf32>
    %29 = vector.extract_strided_slice %8 {offsets = [1, 0], sizes = [1, 128], strides = [1, 1]} : vector<8x128xf32> to vector<1x128xf32>
    %cst_10 = arith.constant dense<0.000000e+00> : vector<1x128xf32>
    %30 = tpu.matmul %28, %1, %cst_10 {dimension_numbers = #tpu.dot_dimension_numbers<[1], [0], [0], [1], [0, 0, 1, 1], [], []>} : vector<1x32xf32>, vector<32x128xf32>, vector<1x128xf32> -> vector<1x128xf32>
    %31 = arith.addf %29, %30 : vector<1x128xf32>
    %32 = arith.negf %31 : vector<1x128xf32>
    %33 = math.exp %32 : vector<1x128xf32>
    %cst_11 = arith.constant 1.000000e+00 : f32
    %34 = vector.broadcast %cst_11 : f32 to vector<1x128xf32>
    %35 = arith.addf %34, %33 : vector<1x128xf32>
    %36 = arith.divf %34, %35 : vector<1x128xf32>
    %37 = math.tanh %31 : vector<1x128xf32>
    %38 = vector.extract_strided_slice %36 {offsets = [0, 0], sizes = [1, 32], strides = [1, 1]} : vector<1x128xf32> to vector<1x32xf32>
    %39 = vector.extract_strided_slice %36 {offsets = [0, 32], sizes = [1, 32], strides = [1, 1]} : vector<1x128xf32> to vector<1x32xf32>
    %40 = vector.extract_strided_slice %37 {offsets = [0, 64], sizes = [1, 32], strides = [1, 1]} : vector<1x128xf32> to vector<1x32xf32>
    %41 = vector.extract_strided_slice %36 {offsets = [0, 96], sizes = [1, 32], strides = [1, 1]} : vector<1x128xf32> to vector<1x32xf32>
    %42 = arith.mulf %39, %26 : vector<1x32xf32>
    %43 = arith.mulf %38, %40 : vector<1x32xf32>
    %44 = arith.addf %42, %43 : vector<1x32xf32>
    %45 = math.tanh %44 : vector<1x32xf32>
    %46 = arith.mulf %41, %45 : vector<1x32xf32>
    %47 = vector.extract_strided_slice %8 {offsets = [2, 0], sizes = [1, 128], strides = [1, 1]} : vector<8x128xf32> to vector<1x128xf32>
    %cst_12 = arith.constant dense<0.000000e+00> : vector<1x128xf32>
    %48 = tpu.matmul %46, %1, %cst_12 {dimension_numbers = #tpu.dot_dimension_numbers<[1], [0], [0], [1], [0, 0, 1, 1], [], []>} : vector<1x32xf32>, vector<32x128xf32>, vector<1x128xf32> -> vector<1x128xf32>
    %49 = arith.addf %47, %48 : vector<1x128xf32>
    %50 = arith.negf %49 : vector<1x128xf32>
    %51 = math.exp %50 : vector<1x128xf32>
    %cst_13 = arith.constant 1.000000e+00 : f32
    %52 = vector.broadcast %cst_13 : f32 to vector<1x128xf32>
    %53 = arith.addf %52, %51 : vector<1x128xf32>
    %54 = arith.divf %52, %53 : vector<1x128xf32>
    %55 = math.tanh %49 : vector<1x128xf32>
    %56 = vector.extract_strided_slice %54 {offsets = [0, 0], sizes = [1, 32], strides = [1, 1]} : vector<1x128xf32> to vector<1x32xf32>
    %57 = vector.extract_strided_slice %54 {offsets = [0, 32], sizes = [1, 32], strides = [1, 1]} : vector<1x128xf32> to vector<1x32xf32>
    %58 = vector.extract_strided_slice %55 {offsets = [0, 64], sizes = [1, 32], strides = [1, 1]} : vector<1x128xf32> to vector<1x32xf32>
    %59 = vector.extract_strided_slice %54 {offsets = [0, 96], sizes = [1, 32], strides = [1, 1]} : vector<1x128xf32> to vector<1x32xf32>
    %60 = arith.mulf %57, %44 : vector<1x32xf32>
    %61 = arith.mulf %56, %58 : vector<1x32xf32>
    %62 = arith.addf %60, %61 : vector<1x32xf32>
    %63 = math.tanh %62 : vector<1x32xf32>
    %64 = arith.mulf %59, %63 : vector<1x32xf32>
    %65 = vector.extract_strided_slice %8 {offsets = [3, 0], sizes = [1, 128], strides = [1, 1]} : vector<8x128xf32> to vector<1x128xf32>
    %cst_14 = arith.constant dense<0.000000e+00> : vector<1x128xf32>
    %66 = tpu.matmul %64, %1, %cst_14 {dimension_numbers = #tpu.dot_dimension_numbers<[1], [0], [0], [1], [0, 0, 1, 1], [], []>} : vector<1x32xf32>, vector<32x128xf32>, vector<1x128xf32> -> vector<1x128xf32>
    %67 = arith.addf %65, %66 : vector<1x128xf32>
    %68 = arith.negf %67 : vector<1x128xf32>
    %69 = math.exp %68 : vector<1x128xf32>
    %cst_15 = arith.constant 1.000000e+00 : f32
    %70 = vector.broadcast %cst_15 : f32 to vector<1x128xf32>
    %71 = arith.addf %70, %69 : vector<1x128xf32>
    %72 = arith.divf %70, %71 : vector<1x128xf32>
    %73 = math.tanh %67 : vector<1x128xf32>
    %74 = vector.extract_strided_slice %72 {offsets = [0, 0], sizes = [1, 32], strides = [1, 1]} : vector<1x128xf32> to vector<1x32xf32>
    %75 = vector.extract_strided_slice %72 {offsets = [0, 32], sizes = [1, 32], strides = [1, 1]} : vector<1x128xf32> to vector<1x32xf32>
    %76 = vector.extract_strided_slice %73 {offsets = [0, 64], sizes = [1, 32], strides = [1, 1]} : vector<1x128xf32> to vector<1x32xf32>
    %77 = vector.extract_strided_slice %72 {offsets = [0, 96], sizes = [1, 32], strides = [1, 1]} : vector<1x128xf32> to vector<1x32xf32>
    %78 = arith.mulf %75, %62 : vector<1x32xf32>
    %79 = arith.mulf %74, %76 : vector<1x32xf32>
    %80 = arith.addf %78, %79 : vector<1x32xf32>
    %81 = math.tanh %80 : vector<1x32xf32>
    %82 = arith.mulf %77, %81 : vector<1x32xf32>
    %83 = vector.extract_strided_slice %8 {offsets = [4, 0], sizes = [1, 128], strides = [1, 1]} : vector<8x128xf32> to vector<1x128xf32>
    %cst_16 = arith.constant dense<0.000000e+00> : vector<1x128xf32>
    %84 = tpu.matmul %82, %1, %cst_16 {dimension_numbers = #tpu.dot_dimension_numbers<[1], [0], [0], [1], [0, 0, 1, 1], [], []>} : vector<1x32xf32>, vector<32x128xf32>, vector<1x128xf32> -> vector<1x128xf32>
    %85 = arith.addf %83, %84 : vector<1x128xf32>
    %86 = arith.negf %85 : vector<1x128xf32>
    %87 = math.exp %86 : vector<1x128xf32>
    %cst_17 = arith.constant 1.000000e+00 : f32
    %88 = vector.broadcast %cst_17 : f32 to vector<1x128xf32>
    %89 = arith.addf %88, %87 : vector<1x128xf32>
    %90 = arith.divf %88, %89 : vector<1x128xf32>
    %91 = math.tanh %85 : vector<1x128xf32>
    %92 = vector.extract_strided_slice %90 {offsets = [0, 0], sizes = [1, 32], strides = [1, 1]} : vector<1x128xf32> to vector<1x32xf32>
    %93 = vector.extract_strided_slice %90 {offsets = [0, 32], sizes = [1, 32], strides = [1, 1]} : vector<1x128xf32> to vector<1x32xf32>
    %94 = vector.extract_strided_slice %91 {offsets = [0, 64], sizes = [1, 32], strides = [1, 1]} : vector<1x128xf32> to vector<1x32xf32>
    %95 = vector.extract_strided_slice %90 {offsets = [0, 96], sizes = [1, 32], strides = [1, 1]} : vector<1x128xf32> to vector<1x32xf32>
    %96 = arith.mulf %93, %80 : vector<1x32xf32>
    %97 = arith.mulf %92, %94 : vector<1x32xf32>
    %98 = arith.addf %96, %97 : vector<1x32xf32>
    %99 = math.tanh %98 : vector<1x32xf32>
    %100 = arith.mulf %95, %99 : vector<1x32xf32>
    %101 = vector.extract_strided_slice %8 {offsets = [5, 0], sizes = [1, 128], strides = [1, 1]} : vector<8x128xf32> to vector<1x128xf32>
    %cst_18 = arith.constant dense<0.000000e+00> : vector<1x128xf32>
    %102 = tpu.matmul %100, %1, %cst_18 {dimension_numbers = #tpu.dot_dimension_numbers<[1], [0], [0], [1], [0, 0, 1, 1], [], []>} : vector<1x32xf32>, vector<32x128xf32>, vector<1x128xf32> -> vector<1x128xf32>
    %103 = arith.addf %101, %102 : vector<1x128xf32>
    %104 = arith.negf %103 : vector<1x128xf32>
    %105 = math.exp %104 : vector<1x128xf32>
    %cst_19 = arith.constant 1.000000e+00 : f32
    %106 = vector.broadcast %cst_19 : f32 to vector<1x128xf32>
    %107 = arith.addf %106, %105 : vector<1x128xf32>
    %108 = arith.divf %106, %107 : vector<1x128xf32>
    %109 = math.tanh %103 : vector<1x128xf32>
    %110 = vector.extract_strided_slice %108 {offsets = [0, 0], sizes = [1, 32], strides = [1, 1]} : vector<1x128xf32> to vector<1x32xf32>
    %111 = vector.extract_strided_slice %108 {offsets = [0, 32], sizes = [1, 32], strides = [1, 1]} : vector<1x128xf32> to vector<1x32xf32>
    %112 = vector.extract_strided_slice %109 {offsets = [0, 64], sizes = [1, 32], strides = [1, 1]} : vector<1x128xf32> to vector<1x32xf32>
    %113 = vector.extract_strided_slice %108 {offsets = [0, 96], sizes = [1, 32], strides = [1, 1]} : vector<1x128xf32> to vector<1x32xf32>
    %114 = arith.mulf %111, %98 : vector<1x32xf32>
    %115 = arith.mulf %110, %112 : vector<1x32xf32>
    %116 = arith.addf %114, %115 : vector<1x32xf32>
    %117 = math.tanh %116 : vector<1x32xf32>
    %118 = arith.mulf %113, %117 : vector<1x32xf32>
    %119 = vector.extract_strided_slice %8 {offsets = [6, 0], sizes = [1, 128], strides = [1, 1]} : vector<8x128xf32> to vector<1x128xf32>
    %cst_20 = arith.constant dense<0.000000e+00> : vector<1x128xf32>
    %120 = tpu.matmul %118, %1, %cst_20 {dimension_numbers = #tpu.dot_dimension_numbers<[1], [0], [0], [1], [0, 0, 1, 1], [], []>} : vector<1x32xf32>, vector<32x128xf32>, vector<1x128xf32> -> vector<1x128xf32>
    %121 = arith.addf %119, %120 : vector<1x128xf32>
    %122 = arith.negf %121 : vector<1x128xf32>
    %123 = math.exp %122 : vector<1x128xf32>
    %cst_21 = arith.constant 1.000000e+00 : f32
    %124 = vector.broadcast %cst_21 : f32 to vector<1x128xf32>
    %125 = arith.addf %124, %123 : vector<1x128xf32>
    %126 = arith.divf %124, %125 : vector<1x128xf32>
    %127 = math.tanh %121 : vector<1x128xf32>
    %128 = vector.extract_strided_slice %126 {offsets = [0, 0], sizes = [1, 32], strides = [1, 1]} : vector<1x128xf32> to vector<1x32xf32>
    %129 = vector.extract_strided_slice %126 {offsets = [0, 32], sizes = [1, 32], strides = [1, 1]} : vector<1x128xf32> to vector<1x32xf32>
    %130 = vector.extract_strided_slice %127 {offsets = [0, 64], sizes = [1, 32], strides = [1, 1]} : vector<1x128xf32> to vector<1x32xf32>
    %131 = vector.extract_strided_slice %126 {offsets = [0, 96], sizes = [1, 32], strides = [1, 1]} : vector<1x128xf32> to vector<1x32xf32>
    %132 = arith.mulf %129, %116 : vector<1x32xf32>
    %133 = arith.mulf %128, %130 : vector<1x32xf32>
    %134 = arith.addf %132, %133 : vector<1x32xf32>
    %135 = math.tanh %134 : vector<1x32xf32>
    %136 = arith.mulf %131, %135 : vector<1x32xf32>
    %137 = vector.extract_strided_slice %8 {offsets = [7, 0], sizes = [1, 128], strides = [1, 1]} : vector<8x128xf32> to vector<1x128xf32>
    %cst_22 = arith.constant dense<0.000000e+00> : vector<1x128xf32>
    %138 = tpu.matmul %136, %1, %cst_22 {dimension_numbers = #tpu.dot_dimension_numbers<[1], [0], [0], [1], [0, 0, 1, 1], [], []>} : vector<1x32xf32>, vector<32x128xf32>, vector<1x128xf32> -> vector<1x128xf32>
    %139 = arith.addf %137, %138 : vector<1x128xf32>
    %140 = arith.negf %139 : vector<1x128xf32>
    %141 = math.exp %140 : vector<1x128xf32>
    %cst_23 = arith.constant 1.000000e+00 : f32
    %142 = vector.broadcast %cst_23 : f32 to vector<1x128xf32>
    %143 = arith.addf %142, %141 : vector<1x128xf32>
    %144 = arith.divf %142, %143 : vector<1x128xf32>
    %145 = math.tanh %139 : vector<1x128xf32>
    %146 = vector.extract_strided_slice %144 {offsets = [0, 0], sizes = [1, 32], strides = [1, 1]} : vector<1x128xf32> to vector<1x32xf32>
    %147 = vector.extract_strided_slice %144 {offsets = [0, 32], sizes = [1, 32], strides = [1, 1]} : vector<1x128xf32> to vector<1x32xf32>
    %148 = vector.extract_strided_slice %145 {offsets = [0, 64], sizes = [1, 32], strides = [1, 1]} : vector<1x128xf32> to vector<1x32xf32>
    %149 = vector.extract_strided_slice %144 {offsets = [0, 96], sizes = [1, 32], strides = [1, 1]} : vector<1x128xf32> to vector<1x32xf32>
    %150 = arith.mulf %147, %134 : vector<1x32xf32>
    %151 = arith.mulf %146, %148 : vector<1x32xf32>
    %152 = arith.addf %150, %151 : vector<1x32xf32>
    %153 = math.tanh %152 : vector<1x32xf32>
    %154 = arith.mulf %149, %153 : vector<1x32xf32>
    %c0_24 = arith.constant 0 : index
    %c0_25 = arith.constant 0 : index
    %155 = vector.load %arg4[%c0_24, %c0_25] : memref<1x32xf32, #tpu.memory_space<vmem>>, vector<1x32xf32>
    %156 = arith.mulf %154, %155 : vector<1x32xf32>
    %cst_26 = arith.constant dense<0.000000e+00> : vector<1xf32>
    %157 = vector.multi_reduction <add>, %156, %cst_26 [1] : vector<1x32xf32> to vector<1xf32>
    %158 = vector.shape_cast %157 : vector<1xf32> to vector<1x1xf32>
    %c0_27 = arith.constant 0 : index
    %c0_28 = arith.constant 0 : index
    %159 = vector.load %arg5[%c0_27, %c0_28] : memref<1x1xf32, #tpu.memory_space<vmem>>, vector<1x1xf32>
    %160 = arith.addf %158, %159 : vector<1x1xf32>
    %c0_29 = arith.constant 0 : index
    %c0_30 = arith.constant 0 : index
    %161 = vector.load %arg6[%c0_29, %c0_30] : memref<1x1xf32, #tpu.memory_space<vmem>>, vector<1x1xf32>
    tpu.vector_store %arg6[%c0_29, %c0_30], %160 {strides = array<i32>} : memref<1x1xf32, #tpu.memory_space<vmem>>, vector<1x1xf32>,
    return
  }
}

</mosaic_0001>

<bundles_post_ra>
// kernel: lstm_forward.1
= control target key start
LH: loop header
LB: loop body
LE: loop exit
PB: predicated region body
PF: predicated region fallthrough
CT: control target
= control target key end

     0   :  { %s1462_s0 = inlined_call_operand.vmem [shape: f32[8,1], index: 0, kind: input, shape index: {}]   ;;  %s1463_s1 = inlined_call_operand.vmem [shape: f32[1,128], index: 1, kind: input, shape index: {}]   ;;  %s1464_s2 = inlined_call_operand.hbm [shape: f32[32,128], index: 2, kind: input, shape index: {}]   ;;  %s1465_s3 = inlined_call_operand.vmem [shape: f32[1,128], index: 3, kind: input, shape index: {}]   ;;  %s1466_s4 = inlined_call_operand.vmem [shape: f32[1,32], index: 4, kind: input, shape index: {}]   ;;  %s1467_s5 = inlined_call_operand.<no memory space> [shape: f32[1,1], index: 5, kind: input, shape index: {}]   ;;  %s1468_s6 = inlined_call_operand.hbm [shape: f32[1,1], index: 6, kind: output, shape index: {}]  }
   0x1   :  { %v11_v0 = vstv %s1467_s5 }
   0x2   :  { %12 = vst [vmem:[#allocation2] sm:$0x1] %v11_v0 }
   0x3   :  { %13 = vsyncpa [#allocation4], 0 }
   0x4   :  { %14 = vsyncpa [#allocation5], 0  ;;  %s1275_s23 = smov [#allocation3]   ;;  %s1227_s27 = scalar_lea.hbm %s1464_s2, 512 }
   0x5   :  { %s24_s24 = sshll.u32 %s1275_s23, 4  ;;  %p1228_p0 = scmp.ne.s32.totalorder %s1464_s2, %s1227_s27  ;;  %s25_s24 = int_to_ptr.vmem [resolvable:$true] %s24_s24 }
   0x6   :  { %p1231_p1 = scmp.lt.u32.totalorder %s1227_s27, %s1464_s2 }
   0x8   :  { %p1233_p2 = pnand %p1231_p1, %p1228_p0 }
   0xa   :  { %1236 = shalt.err (!%p1233_p2)
}
   0xb   :  { %s1237_s5 = scalar_lea.vmem %s25_s24, 512  ;;  %p1242_p4 = scmp.lt.s32.totalorder %s25_s24, %s25_s24 }
   0xc   :  { %p1238_p3 = scmp.ne.s32.totalorder %s25_s24, %s1237_s5  ;;  %p1243_p5 = scmp.lt.s32.totalorder %s1237_s5, %s1237_s5 }
   0xe   :  { %p1244_p6 = por %p1243_p5, %p1242_p4 }
  0x10   :  { %p1245_p7 = pnand %p1244_p6, %p1238_p3 }
  0x12   :  { %1248 = shalt.err (!%p1245_p7)
}
  0x13   :  { %s1276_s8 = smov 128   ;;  %s1277_s9 = smov 8  }
  0x14   :  { %30 = dma.hbm_to_vmem [thread:$0]  %s1464_s2, 512, %s25_s24, [#allocation4], %s1276_s8, %s1276_s8, %s1277_s9  }
  0x15   :  { %1271 = dma.done.wait [#allocation4], 512  }
  0x16   :  { %1272 = vsyncadd [#allocation4], 4294966784  ;;  %v1278_v1 = vmov 0.0|0.0   ;;  %vm1279_vm0 = vmmov 0   ;;  %v1280_v2 = vmov 0.0   ;;  %v1281_v3 = vmov 0  }
  0x17   :  { %1103 = vmatprep.subr.bf16.mxu0 %v1278_v1  ;;  %1023 = vmatprep.mubr.msk.f32.mxu0 %vm1279_vm0, %v1280_v2  ;;  %v41_v4 = vld [vmem:[#allocation3] sm:$0xff]  ;;  %v42_v5 = vld [vmem:[#allocation3 + $0x8] sm:$0xff]  ;;  %v43_v6 = vld [vmem:[#allocation3 + $0x10] sm:$0xff]  ;;  %s1282_s16 = smov 64   ;;  %vm66_vm1 = vcmask 261120   ;;  %s1284_s18 = smov 96  }
  0x18   :  { %1162 = vset.pattern.permute.xlu0 %v1281_v3  ;;  %1109 = vmatprep.subr.bf16.mxu1 %v1278_v1  ;;  %v1342_v7 = vpack.c.bf16 %v42_v5, %v41_v4  ;;  %v44_v8 = vld [vmem:[#allocation3 + $0x18] sm:$0xff]  ;;  %vm927_vm2 = vcmask 261127   ;;  %vm939_vm3 = vcmask 7175  }
  0x19   :  { %1034 = vmatprep.mubr.msk.f32.mxu1 %vm1279_vm0, %v1280_v2  ;;  %v40_v9 = vld [vmem:[%s1462_s0] sm:$0xff]  ;;  %v1348_v10 = vpack.c.bf16 %v44_v8, %v43_v6 }
  0x1a   :  { %49 = vperm.xlu0 %1162, %v40_v9   ;;  %1105 = vmatpush3.bf16.msra.mxu0 %v1342_v7  ;;  %v956_v11 = vld [vmem:[%s1463_s1] ss:$0 sm:$0xff]  ;;  %s1283_s1 = smov 32  }
  0x1b   :  { %1111 = vmatpush3.bf16.msra.mxu1 %v1342_v7  ;;  %1106 = vmatprep.subr.bf16.mxu0 %v1278_v1  ;;  %v957_v14 = vld [vmem:[%s1465_s3] ss:$0 sm:$0xff] }
  0x1c   :  { %1112 = vmatprep.subr.bf16.mxu1 %v1278_v1 }
  0x1e   :  { %1108 = vmatpush3.bf16.msra.mxu0 %v1348_v10 }
  0x1f   :  { %1114 = vmatpush3.bf16.msra.mxu1 %v1348_v10  ;;  %1115 = vmatprep.subr.bf16.mxu0 %v1278_v1 }
  0x20   :  { %1121 = vmatprep.subr.bf16.mxu1 %v1278_v1 }
  0x21   :  { %1024 = vmatmul.mubr.f32.vlgmr.msra.gmra.mrb[0].mxu0 %v1280_v2 }
  0x22   :  { %1117 = vmatpush3.bf16.msra.mxu0 %v1342_v7  ;;  %1045 = vmatprep.mubr.msk.f32.mxu0 %vm1279_vm0, %v1280_v2 }
  0x23   :  { %1118 = vmatprep.subr.bf16.mxu0 %v1278_v1 }
  0x26   :  { %1120 = vmatpush3.bf16.msra.mxu0 %v1348_v10 }
  0x27   :  { %1127 = vmatprep.subr.bf16.mxu0 %v1278_v1 }
  0x99   :  { %v50_v12 = vpop.permute.xlu0 %49 }
  0x9a   :  { %v58_v13 = vmul.f32 %v956_v11, %v50_v12 }
  0x9c   :  { %v1370_v15 = vadd.f32 %v957_v14, %v58_v13 }
  0xf4   :  { %v136_v16 = vpop.f32.mrb[0].mxu0 }
  0xf5   :  { %v140_v17 = vadd.f32 %v136_v16, %v1370_v15  ;;  %v1025_v18 = vpop.f32.mrb[1].mxu0 }
  0xf7   :  { %1163 = vtanh.f32 %v140_v17  ;;  %v958_v20 = vmul.f32 -1.442695, %v140_v17 }
  0xf9   :  { %1165 = vpow2.f32 %v958_v20 }
 0x101   :  { %v1164_v19 = vpop.eup %1163 }
 0x102   :  { %150 = vrot.lane.b32.xlu0 %v1164_v19, %s1282_s16 }
 0x103   :  { %v1166_v21 = vpop.eup %1165 }
 0x104   :  { %v144_v22 = vadd.f32 1.0, %v1166_v21 }
 0x106   :  { %1167 = vrcp.f32 %v144_v22 }
 0x110   :  { %v1168_v23 = vpop.eup %1167 }
 0x111   :  { %v148_v26 = vmul.f32 0.0, %v1168_v23 }
 0x174   :  { %v151_v24 = vpop.permute.xlu0 %150 }
 0x175   :  { %v153_v25 = vmul.f32 %v1168_v23, %v151_v24 }
 0x177   :  { %155 = vrot.lane.b32.xlu1 %v153_v25, %s1283_s1 }
 0x1e9   :  { %v156_v27 = vpop.permute.xlu1 %155 }
 0x1ea   :  { %v158_v28 = vadd.f32 %v156_v27, %v148_v26 }
 0x1ec   :  { %1169 = vtanh.f32 %v158_v28  ;;  %v252_v44 = vrot.slane %v158_v28, 7 }
 0x1f6   :  { %v1170_v29 = vpop.eup %1169 }
 0x1f7   :  { %161 = vrot.lane.b32.xlu1 %v1170_v29, %s1282_s16 }
 0x269   :  { %v162_v30 = vpop.permute.xlu1 %161 }
 0x26a   :  { %v164_v31 = vmul.f32 %v1168_v23, %v162_v30 }
 0x26c   :  { %166 = vrot.lane.b32.xlu0 %v164_v31, %s1283_s1 }
 0x2de   :  { %v167_v32 = vpop.permute.xlu0 %166 }
 0x2df   :  { %1035 = vmatmul.mubr.msk.f32.vlgmr.msra.gmra.mrb[0].mxu1 %vm66_vm1, %v167_v32 }
 0x2e0   :  { %1123 = vmatpush3.bf16.msra.mxu1 %v1342_v7  ;;  %1056 = vmatprep.mubr.msk.f32.mxu1 %vm1279_vm0, %v1280_v2 }
 0x2e1   :  { %1124 = vmatprep.subr.bf16.mxu1 %v1278_v1 }
 0x2e4   :  { %1126 = vmatpush3.bf16.msra.mxu1 %v1348_v10 }
 0x2e5   :  { %1133 = vmatprep.subr.bf16.mxu1 %v1278_v1 }
 0x3b2   :  { %v236_v33 = vpop.f32.mrb[0].mxu1 }
 0x3b3   :  { %v241_v34 = vrot.slane %v236_v33, 7  ;;  %v1036_v35 = vpop.f32.mrb[1].mxu1 }
 0x3b5   :  { %v243_v36 = vadd.f32 %v241_v34, %v1370_v15 }
 0x3b7   :  { %1171 = vtanh.f32 %v243_v36  ;;  %v960_v38 = vmul.f32 -1.442695, %v243_v36 }
 0x3b9   :  { %1173 = vpow2.f32 %v960_v38 }
 0x3c1   :  { %v1172_v37 = vpop.eup %1171 }
 0x3c2   :  { %256 = vrot.lane.b32.xlu1 %v1172_v37, %s1282_s16 }
 0x3c3   :  { %v1174_v39 = vpop.eup %1173 }
 0x3c4   :  { %v247_v40 = vadd.f32 1.0, %v1174_v39 }
 0x3c6   :  { %1175 = vrcp.f32 %v247_v40 }
 0x3d0   :  { %v1176_v41 = vpop.eup %1175 }
 0x3d1   :  { %v254_v45 = vmul.f32 %v1176_v41, %v252_v44 }
 0x434   :  { %v257_v42 = vpop.permute.xlu1 %256 }
 0x435   :  { %v259_v43 = vmul.f32 %v1176_v41, %v257_v42 }
 0x437   :  { %261 = vrot.lane.b32.xlu0 %v259_v43, %s1283_s1 }
 0x4a9   :  { %v262_v46 = vpop.permute.xlu0 %261 }
 0x4aa   :  { %v264_v47 = vadd.f32 %v262_v46, %v254_v45 }
 0x4ac   :  { %1177 = vtanh.f32 %v264_v47  ;;  %v359_v0 = vrot.slane %v264_v47, 7 }
 0x4b6   :  { %v1178_v48 = vpop.eup %1177 }
 0x4b7   :  { %267 = vrot.lane.b32.xlu1 %v1178_v48, %s1282_s16 }
 0x529   :  { %v268_v49 = vpop.permute.xlu1 %267 }
 0x52a   :  { %v270_v50 = vmul.f32 %v1176_v41, %v268_v49 }
 0x52c   :  { %v272_v51 = vrot.slane %v270_v50, 1 }
 0x52e   :  { %273 = vrot.lane.b32.xlu0 %v272_v51, %s1283_s1 }
 0x5a0   :  { %v274_v52 = vpop.permute.xlu0 %273 }
 0x5a1   :  { %1046 = vmatmul.mubr.msk.f32.vlgmr.msra.gmra.mrb[2].mxu0 %vm66_vm1, %v274_v52 }
 0x5a2   :  { %1129 = vmatpush3.bf16.msra.mxu0 %v1342_v7  ;;  %1067 = vmatprep.mubr.msk.f32.mxu0 %vm1279_vm0, %v1280_v2 }
 0x5a3   :  { %1130 = vmatprep.subr.bf16.mxu0 %v1278_v1 }
 0x5a6   :  { %1132 = vmatpush3.bf16.msra.mxu0 %v1348_v10 }
 0x5a7   :  { %1139 = vmatprep.subr.bf16.mxu0 %v1278_v1 }
 0x674   :  { %v343_v53 = vpop.f32.mrb[2].mxu0 }
 0x675   :  { %v348_v54 = vrot.slane %v343_v53, 6  ;;  %v1047_v55 = vpop.f32.mrb[3].mxu0 }
 0x677   :  { %v350_v56 = vadd.f32 %v348_v54, %v1370_v15 }
 0x679   :  { %1179 = vtanh.f32 %v350_v56  ;;  %v962_v58 = vmul.f32 -1.442695, %v350_v56 }
 0x67b   :  { %1181 = vpow2.f32 %v962_v58 }
 0x683   :  { %v1180_v57 = vpop.eup %1179 }
 0x684   :  { %363 = vrot.lane.b32.xlu1 %v1180_v57, %s1282_s16 }
 0x685   :  { %v1182_v59 = vpop.eup %1181 }
 0x686   :  { %v354_v60 = vadd.f32 1.0, %v1182_v59 }
 0x688   :  { %1183 = vrcp.f32 %v354_v60 }
 0x692   :  { %v1184_v61 = vpop.eup %1183 }
 0x693   :  { %v361_v3 = vmul.f32 %v1184_v61, %v359_v0 }
 0x6f6   :  { %v364_v62 = vpop.permute.xlu1 %363 }
 0x6f7   :  { %v366_v63 = vmul.f32 %v1184_v61, %v364_v62 }
 0x6f9   :  { %368 = vrot.lane.b32.xlu0 %v366_v63, %s1283_s1 }
 0x76b   :  { %v369_v4 = vpop.permute.xlu0 %368 }
 0x76c   :  { %v371_v5 = vadd.f32 %v369_v4, %v361_v3 }
 0x76e   :  { %1185 = vtanh.f32 %v371_v5  ;;  %v466_v25 = vrot.slane %v371_v5, 7 }
 0x778   :  { %v1186_v6 = vpop.eup %1185 }
 0x779   :  { %374 = vrot.lane.b32.xlu1 %v1186_v6, %s1282_s16 }
 0x7eb   :  { %v375_v8 = vpop.permute.xlu1 %374 }
 0x7ec   :  { %v377_v9 = vmul.f32 %v1184_v61, %v375_v8 }
 0x7ee   :  { %v379_v11 = vrot.slane %v377_v9, 2 }
 0x7f0   :  { %380 = vrot.lane.b32.xlu0 %v379_v11, %s1283_s1 }
 0x862   :  { %v381_v12 = vpop.permute.xlu0 %380 }
 0x863   :  { %1057 = vmatmul.mubr.msk.f32.vlgmr.msra.gmra.mrb[2].mxu1 %vm66_vm1, %v381_v12 }
 0x864   :  { %1135 = vmatpush3.bf16.msra.mxu1 %v1342_v7  ;;  %1078 = vmatprep.mubr.msk.f32.mxu1 %vm1279_vm0, %v1280_v2 }
 0x865   :  { %1136 = vmatprep.subr.bf16.mxu1 %v1278_v1 }
 0x868   :  { %1138 = vmatpush3.bf16.msra.mxu1 %v1348_v10 }
 0x869   :  { %1145 = vmatprep.subr.bf16.mxu1 %v1278_v1 }
 0x936   :  { %v450_v13 = vpop.f32.mrb[2].mxu1 }
 0x937   :  { %v455_v14 = vrot.slane %v450_v13, 5  ;;  %v1058_v16 = vpop.f32.mrb[3].mxu1 }
 0x939   :  { %v457_v17 = vadd.f32 %v455_v14, %v1370_v15 }
 0x93b   :  { %1187 = vtanh.f32 %v457_v17  ;;  %v964_v19 = vmul.f32 -1.442695, %v457_v17 }
 0x93d   :  { %1189 = vpow2.f32 %v964_v19 }
 0x945   :  { %v1188_v18 = vpop.eup %1187 }
 0x946   :  { %470 = vrot.lane.b32.xlu1 %v1188_v18, %s1282_s16 }
 0x947   :  { %v1190_v20 = vpop.eup %1189 }
 0x948   :  { %v461_v21 = vadd.f32 1.0, %v1190_v20 }
 0x94a   :  { %1191 = vrcp.f32 %v461_v21 }
 0x954   :  { %v1192_v22 = vpop.eup %1191 }
 0x955   :  { %v468_v26 = vmul.f32 %v1192_v22, %v466_v25 }
 0x9b8   :  { %v471_v23 = vpop.permute.xlu1 %470 }
 0x9b9   :  { %v473_v24 = vmul.f32 %v1192_v22, %v471_v23 }
 0x9bb   :  { %475 = vrot.lane.b32.xlu0 %v473_v24, %s1283_s1 }
 0xa2d   :  { %v476_v27 = vpop.permute.xlu0 %475 }
 0xa2e   :  { %v478_v28 = vadd.f32 %v476_v27, %v468_v26 }
 0xa30   :  { %1193 = vtanh.f32 %v478_v28  ;;  %v573_v45 = vrot.slane %v478_v28, 7 }
 0xa3a   :  { %v1194_v29 = vpop.eup %1193 }
 0xa3b   :  { %481 = vrot.lane.b32.xlu1 %v1194_v29, %s1282_s16 }
 0xaad   :  { %v482_v30 = vpop.permute.xlu1 %481 }
 0xaae   :  { %v484_v31 = vmul.f32 %v1192_v22, %v482_v30 }
 0xab0   :  { %v486_v32 = vrot.slane %v484_v31, 3 }
 0xab2   :  { %487 = vrot.lane.b32.xlu0 %v486_v32, %s1283_s1 }
 0xb24   :  { %v488_v33 = vpop.permute.xlu0 %487 }
 0xb25   :  { %1068 = vmatmul.mubr.msk.f32.vlgmr.msra.gmra.mrb[4].mxu0 %vm66_vm1, %v488_v33 }
 0xb26   :  { %1141 = vmatpush3.bf16.msra.mxu0 %v1342_v7  ;;  %1089 = vmatprep.mubr.msk.f32.mxu0 %vm1279_vm0, %v1280_v2 }
 0xb27   :  { %1142 = vmatprep.subr.bf16.mxu0 %v1278_v1 }
 0xb2a   :  { %1144 = vmatpush3.bf16.msra.mxu0 %v1348_v10 }
 0xbf8   :  { %v557_v34 = vpop.f32.mrb[4].mxu0 }
 0xbf9   :  { %v562_v35 = vrot.slane %v557_v34, 4  ;;  %v1069_v36 = vpop.f32.mrb[5].mxu0 }
 0xbfb   :  { %v564_v37 = vadd.f32 %v562_v35, %v1370_v15 }
 0xbfd   :  { %1195 = vtanh.f32 %v564_v37  ;;  %v966_v39 = vmul.f32 -1.442695, %v564_v37 }
 0xbff   :  { %1197 = vpow2.f32 %v966_v39 }
 0xc07   :  { %v1196_v38 = vpop.eup %1195 }
 0xc08   :  { %577 = vrot.lane.b32.xlu1 %v1196_v38, %s1282_s16 }
 0xc09   :  { %v1198_v40 = vpop.eup %1197 }
 0xc0a   :  { %v568_v41 = vadd.f32 1.0, %v1198_v40 }
 0xc0c   :  { %1199 = vrcp.f32 %v568_v41 }
 0xc16   :  { %v1200_v42 = vpop.eup %1199 }
 0xc17   :  { %v575_v46 = vmul.f32 %v1200_v42, %v573_v45 }
 0xc7a   :  { %v578_v43 = vpop.permute.xlu1 %577 }
 0xc7b   :  { %v580_v44 = vmul.f32 %v1200_v42, %v578_v43 }
 0xc7d   :  { %582 = vrot.lane.b32.xlu0 %v580_v44, %s1283_s1 }
 0xcef   :  { %v583_v47 = vpop.permute.xlu0 %582 }
 0xcf0   :  { %v585_v48 = vadd.f32 %v583_v47, %v575_v46 }
 0xcf2   :  { %1201 = vtanh.f32 %v585_v48 }
 0xcfc   :  { %v1202_v49 = vpop.eup %1201 }
 0xcfd   :  { %588 = vrot.lane.b32.xlu1 %v1202_v49, %s1282_s16 }
 0xd6f   :  { %v589_v50 = vpop.permute.xlu1 %588 }
 0xd70   :  { %v591_v51 = vmul.f32 %v1200_v42, %v589_v50  ;;  %v973_v42 = vld [vmem:[%s1466_s4] ss:$0 sm:$0xff]  ;;  %s1285_s4 = smov [#allocation6]  }
 0xd71   :  { %s947_s19 = sshll.u32 %s1285_s4, 4  ;;  %s948_s19 = int_to_ptr.vmem [resolvable:$true] %s947_s19 }
 0xd72   :  { %v593_v52 = vrot.slane %v591_v51, 4  ;;  %s1249_s20 = scalar_lea.vmem %s948_s19, 16  ;;  %s1253_s21 = scalar_lea.vmem %s948_s19, 32 }
 0xd73   :  { %p1250_p8 = scmp.ne.s32.totalorder %s948_s19, %s1249_s20  ;;  %p1254_p9 = scmp.lt.s32.totalorder %s948_s19, %s948_s19 }
 0xd74   :  { %594 = vrot.lane.b32.xlu0 %v593_v52, %s1283_s1  ;;  %p1255_p10 = scmp.lt.s32.totalorder %s1253_s21, %s1249_s20 }
 0xd76   :  { %p1256_p11 = por %p1255_p10, %p1254_p9 }
 0xd78   :  { %p1257_p12 = pnand %p1256_p11, %p1250_p8 }
 0xde6   :  { %v595_v53 = vpop.permute.xlu0 %594 }
 0xde7   :  { %1079 = vmatmul.mubr.msk.f32.vlgmr.msra.gmra.mrb[4].mxu1 %vm66_vm1, %v595_v53  ;;  %v974_v53 = vld [vmem:[#allocation2] ss:$0 sm:$0xff] }
 0xde8   :  { %1147 = vmatpush3.bf16.msra.mxu1 %v1342_v7  ;;  %1100 = vmatprep.mubr.msk.f32.mxu1 %vm1279_vm0, %v1280_v2 }
 0xde9   :  { %1148 = vmatprep.subr.bf16.mxu1 %v1278_v1  ;;  %v680_v1 = vrot.slane %v585_v48, 7 }
 0xdec   :  { %1150 = vmatpush3.bf16.msra.mxu1 %v1348_v10 }
 0xeba   :  { %v664_v54 = vpop.f32.mrb[4].mxu1 }
 0xebb   :  { %v669_v55 = vrot.slane %v664_v54, 3  ;;  %v1080_v56 = vpop.f32.mrb[5].mxu1 }
 0xebd   :  { %v671_v57 = vadd.f32 %v669_v55, %v1370_v15 }
 0xebf   :  { %1203 = vtanh.f32 %v671_v57  ;;  %v968_v59 = vmul.f32 -1.442695, %v671_v57 }
 0xec1   :  { %1205 = vpow2.f32 %v968_v59 }
 0xec9   :  { %v1204_v58 = vpop.eup %1203 }
 0xeca   :  { %684 = vrot.lane.b32.xlu1 %v1204_v58, %s1282_s16 }
 0xecb   :  { %v1206_v60 = vpop.eup %1205 }
 0xecc   :  { %v675_v7 = vadd.f32 1.0, %v1206_v60 }
 0xece   :  { %1207 = vrcp.f32 %v675_v7 }
 0xed8   :  { %v1208_v61 = vpop.eup %1207 }
 0xed9   :  { %v682_v10 = vmul.f32 %v1208_v61, %v680_v1 }
 0xf3c   :  { %v685_v2 = vpop.permute.xlu1 %684 }
 0xf3d   :  { %v687_v62 = vmul.f32 %v1208_v61, %v685_v2 }
 0xf3f   :  { %689 = vrot.lane.b32.xlu0 %v687_v62, %s1283_s1 }
 0xfb1   :  { %v690_v63 = vpop.permute.xlu0 %689 }
 0xfb2   :  { %v692_v0 = vadd.f32 %v690_v63, %v682_v10 }
 0xfb4   :  { %1209 = vtanh.f32 %v692_v0  ;;  %v787_v22 = vrot.slane %v692_v0, 7 }
 0xfbe   :  { %v1210_v3 = vpop.eup %1209 }
 0xfbf   :  { %695 = vrot.lane.b32.xlu1 %v1210_v3, %s1282_s16 }
0x1031   :  { %v696_v4 = vpop.permute.xlu1 %695 }
0x1032   :  { %v698_v5 = vmul.f32 %v1208_v61, %v696_v4 }
0x1034   :  { %v700_v6 = vrot.slane %v698_v5, 5 }
0x1036   :  { %701 = vrot.lane.b32.xlu0 %v700_v6, %s1283_s1 }
0x10a8   :  { %v702_v8 = vpop.permute.xlu0 %701 }
0x10a9   :  { %1090 = vmatmul.mubr.msk.f32.vlgmr.msra.gmra.mrb[6].mxu0 %vm66_vm1, %v702_v8 }
0x117c   :  { %v771_v9 = vpop.f32.mrb[6].mxu0 }
0x117d   :  { %v776_v11 = vrot.slane %v771_v9, 2  ;;  %v1091_v12 = vpop.f32.mrb[7].mxu0 }
0x117f   :  { %v778_v13 = vadd.f32 %v776_v11, %v1370_v15 }
0x1181   :  { %1211 = vtanh.f32 %v778_v13  ;;  %v970_v16 = vmul.f32 -1.442695, %v778_v13 }
0x1183   :  { %1213 = vpow2.f32 %v970_v16 }
0x118b   :  { %v1212_v14 = vpop.eup %1211 }
0x118c   :  { %791 = vrot.lane.b32.xlu1 %v1212_v14, %s1282_s16 }
0x118d   :  { %v1214_v17 = vpop.eup %1213 }
0x118e   :  { %v782_v18 = vadd.f32 1.0, %v1214_v17 }
0x1190   :  { %1215 = vrcp.f32 %v782_v18 }
0x119a   :  { %v1216_v19 = vpop.eup %1215 }
0x119b   :  { %v789_v23 = vmul.f32 %v1216_v19, %v787_v22 }
0x11fe   :  { %v792_v20 = vpop.permute.xlu1 %791 }
0x11ff   :  { %v794_v21 = vmul.f32 %v1216_v19, %v792_v20 }
0x1201   :  { %796 = vrot.lane.b32.xlu0 %v794_v21, %s1283_s1 }
0x1273   :  { %v797_v24 = vpop.permute.xlu0 %796 }
0x1274   :  { %v799_v25 = vadd.f32 %v797_v24, %v789_v23 }
0x1276   :  { %1217 = vtanh.f32 %v799_v25 }
0x1280   :  { %v1218_v26 = vpop.eup %1217 }
0x1281   :  { %802 = vrot.lane.b32.xlu1 %v1218_v26, %s1282_s16 }
0x12f3   :  { %v803_v27 = vpop.permute.xlu1 %802 }
0x12f4   :  { %v805_v28 = vmul.f32 %v1216_v19, %v803_v27 }
0x12f6   :  { %v807_v29 = vrot.slane %v805_v28, 6 }
0x12f8   :  { %808 = vrot.lane.b32.xlu0 %v807_v29, %s1283_s1 }
0x136a   :  { %v809_v30 = vpop.permute.xlu0 %808 }
0x136b   :  { %1101 = vmatmul.mubr.msk.f32.vlgmr.msra.gmra.mrb[6].mxu1 %vm66_vm1, %v809_v30 }
0x143e   :  { %v878_v31 = vpop.f32.mrb[6].mxu1 }
0x143f   :  { %v883_v32 = vrot.slane %v878_v31, 1  ;;  %v1102_v33 = vpop.f32.mrb[7].mxu1 }
0x1441   :  { %v885_v34 = vadd.f32 %v883_v32, %v1370_v15  ;;  %v894_v15 = vrot.slane %v799_v25, 7 }
0x1443   :  { %1219 = vtanh.f32 %v885_v34  ;;  %v972_v36 = vmul.f32 -1.442695, %v885_v34 }
0x1445   :  { %1221 = vpow2.f32 %v972_v36 }
0x144d   :  { %v1220_v35 = vpop.eup %1219 }
0x144e   :  { %898 = vrot.lane.b32.xlu1 %v1220_v35, %s1282_s16 }
0x144f   :  { %v1222_v37 = vpop.eup %1221 }
0x1450   :  { %v889_v38 = vadd.f32 1.0, %v1222_v37 }
0x1452   :  { %1223 = vrcp.f32 %v889_v38 }
0x145c   :  { %v1224_v39 = vpop.eup %1223 }
0x145d   :  { %v896_v43 = vmul.f32 %v1224_v39, %v894_v15 }
0x14c0   :  { %v899_v40 = vpop.permute.xlu1 %898 }
0x14c1   :  { %v901_v41 = vmul.f32 %v1224_v39, %v899_v40 }
0x14c3   :  { %903 = vrot.lane.b32.xlu0 %v901_v41, %s1283_s1 }
0x14c7   :  { %919 = vrot.lane.b32.xlu0 %v973_v42, %s1284_s18 }
0x1535   :  { %v904_v44 = vpop.permute.xlu0 %903 }
0x1536   :  { %v906_v45 = vadd.f32 %v904_v44, %v896_v43 }
0x1538   :  { %1225 = vtanh.f32 %v906_v45 }
0x1539   :  { %v920_v48 = vpop.permute.xlu0 %919 }
0x1542   :  { %v1226_v46 = vpop.eup %1225 }
0x1543   :  { %909 = vrot.lane.b32.xlu1 %v1226_v46, %s1282_s16 }
0x15b5   :  { %v910_v47 = vpop.permute.xlu1 %909 }
0x15b6   :  { %v912_v49 = vmul.f32 %v1224_v39, %v910_v47 }
0x15b8   :  { %v922_v50 = vmul.f32 %v920_v48, %v912_v49 }
0x15ba   :  { %924 = vrot.lane.b32.xlu1 %v922_v50, %s1283_s1 }
0x162c   :  { %v925_v51 = vpop.permute.xlu1 %924 }
0x162d   :  { %v928_v52 = vsel %vm927_vm2, %v925_v51, 0.0 }
0x162e   :  { %929 = vadd.xlane.f32.xlu0 %v928_v52 }
0x16bb   :  { %v930_v54 = vpop.xlane.xlu0 %929 }
0x16bc   :  { %v938_v55 = vadd.f32 %v974_v53, %v930_v54 }
0x16be   :  { %940 = vst.msk [vmem:[#allocation6 - $0x7] sm:$0x80] %vm939_vm3, %v938_v55 }
0x16bf   :  { %1260 = shalt.err (!%p1257_p12)
}
0x16c0   :  { %s1261_s24 = scalar_lea.hbm %s1468_s6, 16 }
0x16c1   :  { %p1262_p13 = scmp.ne.s32.totalorder %s1468_s6, %s1261_s24  ;;  %p1265_p0 = scmp.lt.u32.totalorder %s1261_s24, %s1468_s6 }
0x16c3   :  { %p1267_p1 = pnand %p1265_p0, %p1262_p13 }
0x16c5   :  { %1270 = shalt.err (!%p1267_p1)
}
0x16c6   :  { %950 = dma.vmem_to_hbm [thread:$0]  %s948_s19, 16, %s1468_s6, [#allocation5]  }
0x16c7   :  { %1273 = dma.done.wait [#allocation5], 16  }
0x16c8   :  { %1274 = vsyncadd [#allocation5], 4294967280 }
0x16c9   :  { %954 = vsyncpa [#allocation4], 1 }
0x16ca   :  { %955 = vsyncpa [#allocation5], 1 }

</bundles_post_ra>
